<compile_context>
chip_gen: v6e
topology: v6e:2x2x1
jax: 0.10.0
libtpu: 0.0.40
codegen_flags: <defaults>
</compile_context>

<pallas_src>
from functools import partial
from typing import Mapping, Sequence

import numpy as np
import jax
import jax.numpy as jnp
from jax.experimental import pallas as pl
from jax.experimental.pallas import tpu as pltpu

LANE = 128
SUBLANE = 8
_VMEM_SPEC = pl.BlockSpec(memory_space=pltpu.MemorySpace.VMEM)


def _round_up(n: int, m: int) -> int:
    return ((n + m - 1) // m) * m


def _round_up_lanes(n: int) -> int:
    return max(LANE, _round_up(n, LANE))


def _pad_last(a, target: int):
    n = a.shape[-1]
    if n == target:
        return a
    pad = [(0, 0)] * (a.ndim - 1) + [(0, target - n)]
    return jnp.pad(a, pad)


def _pad_rows(a, m_pad: int):
    if a.shape[0] == m_pad:
        return a
    return jnp.pad(a, ((0, m_pad - a.shape[0]),) + ((0, 0),) * (a.ndim - 1))


def _nbytes(shape, dtype) -> int:
    return int(np.prod(shape)) * np.dtype(dtype).itemsize


def _vmem_limit(*specs) -> int:
    """Scoped-VMEM limit sized to the resident footprint (gridless kernels)."""
    need = sum(_nbytes(s, d) for s, d in specs)
    return int(min(max(2 * need, 16 << 20), 64 << 20))


# ----------------------------------------------------------------------------
# Pallas kernels (fused encoder + head, everything resident in VMEM)
# ----------------------------------------------------------------------------
def _encoder_kernel(obs_ref, we_ref, be_ref, o_ref):
    # feats = relu(obs @ W_e + b_e), lane-padded output (unmasked vst).
    obs = obs_ref[...].astype(jnp.bfloat16)
    acc = jnp.dot(obs, we_ref[...], preferred_element_type=jnp.float32)
    o_ref[...] = jnp.maximum(acc + be_ref[...], 0.0).astype(o_ref.dtype)


def _actor_kernel(obs_ref, we_ref, be_ref, wa_ref, ba_ref, o_ref):
    # out = tanh(relu(obs @ W_e + b_e) @ W_a + b_a)
    obs = obs_ref[...].astype(jnp.bfloat16)
    feats = jnp.dot(obs, we_ref[...], preferred_element_type=jnp.float32)
    feats = jnp.maximum(feats + be_ref[...], 0.0)
    head = jnp.dot(feats.astype(jnp.bfloat16), wa_ref[...],
                   preferred_element_type=jnp.float32)
    o_ref[...] = jnp.tanh(head + ba_ref[...]).astype(o_ref.dtype)


def _critic_kernel(obs_ref, act_ref, we_ref, be_ref, wc_ref, bc_ref, o_ref):
    # Action is already lane-placed into the padded feature lanes (act_ref),
    # and W_ca rows are merged into wc_ref: ONE head dot, no K=8 MXU pass.
    obs = obs_ref[...].astype(jnp.bfloat16)
    feats = jnp.dot(obs, we_ref[...], preferred_element_type=jnp.float32)
    feats = jnp.maximum(feats + be_ref[...], 0.0)
    f_aug = (feats + act_ref[...]).astype(jnp.bfloat16)
    out = jnp.dot(f_aug, wc_ref[...], preferred_element_type=jnp.float32)
    o_ref[...] = (out + bc_ref[...]).astype(o_ref.dtype)


def _joint_kernel(obs_ref, act_ref, we_ref, be_ref, wh_ref, bh_ref, o_ref, *,
                  na_pad):
    # Shared encoder computed ONCE; both heads in ONE 256-wide packed MXU dot.
    obs = obs_ref[...].astype(jnp.bfloat16)
    feats = jnp.dot(obs, we_ref[...], preferred_element_type=jnp.float32)
    feats = jnp.maximum(feats + be_ref[...], 0.0)
    f_aug = (feats + act_ref[...]).astype(jnp.bfloat16)     # action folded into padded lanes
    heads = jnp.dot(f_aug, wh_ref[...], preferred_element_type=jnp.float32)
    heads = heads + bh_ref[...]
    # Single lane-dense output slab: tanh on the actor half, identity on the critic half.
    lane = jax.lax.broadcasted_iota(jnp.int32, heads.shape, 1)
    o_ref[...] = jnp.where(lane < na_pad, jnp.tanh(heads), heads).astype(o_ref.dtype)


# ----------------------------------------------------------------------------
# jitted wrappers (single dispatch; pad rows, slice padded lanes back)
# ----------------------------------------------------------------------------
@partial(jax.jit, static_argnames=("h_true",))
def _encoder_apply(obs, w_enc, b_enc, *, h_true):
    m = obs.shape[0]
    m_pad = _round_up(m, SUBLANE)
    obs_p = _pad_rows(obs, m_pad)
    h_pad = w_enc.shape[1]
    limit = _vmem_limit((obs_p.shape, obs_p.dtype), (w_enc.shape, w_enc.dtype),
                        (b_enc.shape, b_enc.dtype), ((m_pad, h_pad), jnp.float32))
    out = pl.pallas_call(
        _encoder_kernel,
        out_shape=jax.ShapeDtypeStruct((m_pad, h_pad), jnp.float32),
        in_specs=[_VMEM_SPEC] * 3,
        out_specs=_VMEM_SPEC,
        compiler_params=pltpu.CompilerParams(vmem_limit_bytes=limit),
    )(obs_p, w_enc, b_enc)
    return out[:m, :h_true]


@partial(jax.jit, static_argnames=("n_out",))
def _actor_apply(obs, w_enc, b_enc, w_act, b_act, *, n_out):
    m = obs.shape[0]
    m_pad = _round_up(m, SUBLANE)
    obs_p = _pad_rows(obs, m_pad)
    n_pad = w_act.shape[1]
    limit = _vmem_limit((obs_p.shape, obs_p.dtype), (w_enc.shape, w_enc.dtype),
                        (b_enc.shape, b_enc.dtype), (w_act.shape, w_act.dtype),
                        (b_act.shape, b_act.dtype), ((m_pad, n_pad), jnp.float32))
    out = pl.pallas_call(
        _actor_kernel,
        out_shape=jax.ShapeDtypeStruct((m_pad, n_pad), jnp.float32),
        in_specs=[_VMEM_SPEC] * 5,
        out_specs=_VMEM_SPEC,
        compiler_params=pltpu.CompilerParams(vmem_limit_bytes=limit),
    )(obs_p, w_enc, b_enc, w_act, b_act)
    return out[:m, :n_out]


@partial(jax.jit, static_argnames=("hidden", "n_out"))
def _critic_apply(obs, action, w_enc, b_enc, w_comb, b_crt, *, hidden, n_out):
    m = obs.shape[0]
    m_pad = _round_up(m, SUBLANE)
    h_pad = w_enc.shape[1]
    act_dim = action.shape[1]
    obs_p = _pad_rows(obs, m_pad)
    # Lane-place the action into the zero feature lanes [hidden : hidden+act_dim].
    act_slab = jnp.pad(action, ((0, m_pad - m), (hidden, h_pad - hidden - act_dim)))
    n_pad = w_comb.shape[1]
    limit = _vmem_limit((obs_p.shape, obs_p.dtype), (act_slab.shape, act_slab.dtype),
                        (w_enc.shape, w_enc.dtype), (b_enc.shape, b_enc.dtype),
                        (w_comb.shape, w_comb.dtype), (b_crt.shape, b_crt.dtype),
                        ((m_pad, n_pad), jnp.float32))
    out = pl.pallas_call(
        _critic_kernel,
        out_shape=jax.ShapeDtypeStruct((m_pad, n_pad), jnp.float32),
        in_specs=[_VMEM_SPEC] * 6,
        out_specs=_VMEM_SPEC,
        compiler_params=pltpu.CompilerParams(vmem_limit_bytes=limit),
    )(obs_p, act_slab, w_enc, b_enc, w_comb, b_crt)
    return out[:m, :n_out]


@partial(jax.jit, static_argnames=("hidden", "na_pad", "n_actor", "n_critic"))
def _joint_apply(obs, action, w_enc, b_enc, w_heads, b_heads, *,
                 hidden, na_pad, n_actor, n_critic):
    m = obs.shape[0]
    m_pad = _round_up(m, SUBLANE)
    h_pad = w_enc.shape[1]
    act_dim = action.shape[1]
    obs_p = _pad_rows(obs, m_pad)
    act_slab = jnp.pad(action, ((0, m_pad - m), (hidden, h_pad - hidden - act_dim)))
    n_total = w_heads.shape[1]
    limit = _vmem_limit((obs_p.shape, obs_p.dtype), (act_slab.shape, act_slab.dtype),
                        (w_enc.shape, w_enc.dtype), (b_enc.shape, b_enc.dtype),
                        (w_heads.shape, w_heads.dtype), (b_heads.shape, b_heads.dtype),
                        ((m_pad, n_total), jnp.float32))
    out = pl.pallas_call(
        partial(_joint_kernel, na_pad=na_pad),
        out_shape=jax.ShapeDtypeStruct((m_pad, n_total), jnp.float32),
        in_specs=[_VMEM_SPEC] * 6,
        out_specs=_VMEM_SPEC,
        compiler_params=pltpu.CompilerParams(vmem_limit_bytes=limit),
    )(obs_p, act_slab, w_enc, b_enc, w_heads, b_heads)
    return out[:m, :n_actor], out[:m, na_pad:na_pad + n_critic]


# ----------------------------------------------------------------------------
# Synthetic sub-modules (Encoder shared between Actor and Critic)
# ----------------------------------------------------------------------------
class Encoder:
    """obs -> relu(obs @ W_e + b_e); columns lane-padded to 128 with zeros."""

    def __init__(self, w, b):
        self.obs_dim, self.hidden = w.shape
        self.h_pad = _round_up_lanes(self.hidden)
        # bf16 weights (half the DMA bytes, MXU-native); zero-padded lanes stay zero
        # through relu, so padded feature lanes are exactly 0 (needed for action fold).
        self.w = _pad_last(w.astype(jnp.bfloat16), self.h_pad)
        self.b = _pad_last(b.astype(jnp.float32).reshape(1, -1), self.h_pad)

    def __call__(self, obs):
        return _encoder_apply(obs, self.w, self.b, h_true=self.hidden)


class Actor:
    """obs -> tanh(encoder(obs) @ W_a + b_a), fully fused in one pallas_call."""

    def __init__(self, encoder: Encoder, w, b):
        self.encoder = encoder
        hidden, self.n_out = w.shape
        assert hidden == encoder.hidden
        self.n_pad = _round_up_lanes(self.n_out)
        w_p = jnp.zeros((encoder.h_pad, self.n_pad), jnp.bfloat16)
        self.w_p = w_p.at[:hidden, :self.n_out].set(w.astype(jnp.bfloat16))
        self.b_p = _pad_last(b.astype(jnp.float32).reshape(1, -1), self.n_pad)

    def __call__(self, obs):
        return _actor_apply(obs, self.encoder.w, self.encoder.b,
                            self.w_p, self.b_p, n_out=self.n_out)


class Critic:
    """(obs, action) -> concat(encoder(obs), action) @ W_c + b_c.

    The concat AND the separate K=8 action dot are eliminated: W_c's feature
    rows sit at [0:hidden] and its action rows at [hidden:hidden+act_dim] of a
    single combined (h_pad, n_pad) weight; the wrapper lane-places the action
    into the matching (zero) feature lanes.
    """

    def __init__(self, encoder: Encoder, w, b):
        self.encoder = encoder
        hidden = encoder.hidden
        self.act_dim = w.shape[0] - hidden
        self.n_out = w.shape[1]
        self.n_pad = _round_up_lanes(self.n_out)
        assert hidden + self.act_dim <= encoder.h_pad, (
            "action fold needs hidden + action_dim <= encoder lane pad")
        # TODO(synk): fall back to a separate action @ W_ca dot when
        # hidden + action_dim exceeds the encoder lane pad.
        w_comb = jnp.zeros((encoder.h_pad, self.n_pad), jnp.bfloat16)
        self.w_comb = w_comb.at[:hidden + self.act_dim, :self.n_out].set(
            w.astype(jnp.bfloat16))
        self.b_p = _pad_last(b.astype(jnp.float32).reshape(1, -1), self.n_pad)

    def __call__(self, obs, action):
        return _critic_apply(obs, action, self.encoder.w, self.encoder.b,
                             self.w_comb, self.b_p,
                             hidden=self.encoder.hidden, n_out=self.n_out)


# ----------------------------------------------------------------------------
# ModuleDict: exact dispatch semantics of the PyTorch module
# ----------------------------------------------------------------------------
class ModuleDict:
    def __init__(self, modules):
        self.modules_dict = dict(modules)
        self._joint_cache = None

    def _joint_params(self, actor: Actor, critic: Critic):
        if self._joint_cache is None:
            # Packed head weight: one (h_pad, 2*128) bf16 matrix -> one 256-wide MXU dot.
            w_heads = jnp.concatenate([actor.w_p, critic.w_comb], axis=1)
            b_heads = jnp.concatenate([actor.b_p, critic.b_p], axis=1)
            self._joint_cache = (w_heads, b_heads)
        return self._joint_cache

    # Fast path for the canonical init call: shared encoder computed once,
    # both heads emitted by a single joint kernel (one packed head dot, one
    # lane-dense output slab). Falls back to generic per-module dispatch.
    def _maybe_joint_init(self, kwargs):
        if set(self.modules_dict.keys()) != {"actor", "critic"}:
            return None
        actor = self.modules_dict["actor"]
        critic = self.modules_dict["critic"]
        if not isinstance(actor, Actor) or not isinstance(critic, Critic):
            return None
        if actor.encoder is not critic.encoder:
            return None

        av, cv = kwargs["actor"], kwargs["critic"]
        if isinstance(av, Mapping):
            if set(av.keys()) != {"obs"}:
                return None
            a_obs = av["obs"]
        elif isinstance(av, Sequence) and not isinstance(av, (str, bytes)):
            if len(av) != 1:
                return None
            a_obs = av[0]
        else:
            a_obs = av

        if isinstance(cv, Mapping):
            if set(cv.keys()) != {"obs", "action"}:
                return None
            c_obs, c_act = cv["obs"], cv["action"]
        elif isinstance(cv, Sequence) and not isinstance(cv, (str, bytes)):
            if len(cv) != 2:
                return None
            c_obs, c_act = cv
        else:
            return None

        if a_obs is not c_obs:   # only fuse when the encoder input is literally shared
            return None

        enc = actor.encoder
        w_heads, b_heads = self._joint_params(actor, critic)
        actor_out, critic_out = _joint_apply(
            a_obs, c_act, enc.w, enc.b, w_heads, b_heads,
            hidden=enc.hidden, na_pad=actor.n_pad,
            n_actor=actor.n_out, n_critic=critic.n_out)
        return {"actor": actor_out, "critic": critic_out}

    def __call__(self, *args, name=None, **kwargs):
        if name is None:
            if kwargs.keys() != self.modules_dict.keys():
                raise ValueError(
                    "When `name` is not specified, kwargs must contain the "
                    f"arguments for each module. Got kwargs keys {kwargs.keys()} "
                    f"but module keys {self.modules_dict.keys()}"
                )
            joint = self._maybe_joint_init(kwargs)
            if joint is not None:
                return joint
            out = {}
            for key, value in kwargs.items():
                if isinstance(value, Mapping):
                    out[key] = self.modules_dict[key](**value)
                elif isinstance(value, Sequence) and not isinstance(value, (str, bytes)):
                    out[key] = self.modules_dict[key](*value)
                else:
                    out[key] = self.modules_dict[key](value)
            return out
        return self.modules_dict[name](*args, **kwargs)


# ----------------------------------------------------------------------------
# Main
# ----------------------------------------------------------------------------
if __name__ == "__main__":
    batch, obs_dim, hidden, action_dim = 4, 32, 32, 8

    key = jax.random.PRNGKey(0)
    k_obs, k_act, k_we, k_wa, k_wc = jax.random.split(key, 5)

    # Deterministic parameter init (synthetic, no checkpoint loading).
    w_enc = jax.random.normal(k_we, (obs_dim, hidden), jnp.float32) * 0.1
    b_enc = jnp.zeros((1, hidden), jnp.float32)
    w_act = jax.random.normal(k_wa, (hidden, action_dim), jnp.float32) * 0.1
    b_act = jnp.zeros((1, action_dim), jnp.float32)
    w_crt = jax.random.normal(k_wc, (hidden + action_dim, 1), jnp.float32) * 0.1
    b_crt = jnp.zeros((1, 1), jnp.float32)

    shared_encoder = Encoder(w_enc, b_enc)          # shared params between heads
    actor = Actor(shared_encoder, w_act, b_act)
    critic = Critic(shared_encoder, w_crt, b_crt)
    model_def = ModuleDict({"actor": actor, "critic": critic})

    example_obs = jax.random.normal(k_obs, (batch, obs_dim), jnp.float32)
    example_action = jax.random.normal(k_act, (batch, action_dim), jnp.float32)

    # --- "init" style call (name=None): single joint fused kernel -------------
    init_out = model_def(
        actor=example_obs,
        critic={"obs": example_obs, "action": example_action},
    )
    jax.block_until_ready(init_out)

    # --- named calls: one fused kernel each ------------------------------------
    actor_out = model_def(example_obs, name="actor")
    critic_out = model_def(example_obs, action=example_action, name="critic")
    enc_out = model_def(example_obs, name="encoder") if "encoder" in model_def.modules_dict else shared_encoder(example_obs)
    jax.block_until_ready((actor_out, critic_out, enc_out))

    # --- reference check (plain JAX, mirroring bf16 operands / f32 accumulation)
    bf16, f32 = jnp.bfloat16, jnp.float32
    obs_b = example_obs.astype(bf16)
    feats_ref = jnp.maximum(
        jnp.dot(obs_b, w_enc.astype(bf16), preferred_element_type=f32) + b_enc, 0.0)
    fb = feats_ref.astype(bf16)
    actor_ref = jnp.tanh(
        jnp.dot(fb, w_act.astype(bf16), preferred_element_type=f32) + b_act)
    critic_ref = (
        jnp.dot(fb, w_crt[:hidden].astype(bf16), preferred_element_type=f32)
        + jnp.dot(example_action.astype(bf16), w_crt[hidden:].astype(bf16),
                  preferred_element_type=f32)
        + b_crt)

    assert actor_out.shape == (batch, action_dim)
    assert critic_out.shape == (batch, 1)
    assert enc_out.shape == (batch, hidden)
    tol = dict(atol=1e-3, rtol=1e-3)
    assert jnp.allclose(enc_out, feats_ref, **tol)
    assert jnp.allclose(actor_out, actor_ref, **tol)
    assert jnp.allclose(critic_out, critic_ref, **tol)
    assert jnp.allclose(init_out["actor"], actor_ref, **tol)
    assert jnp.allclose(init_out["critic"], critic_ref, **tol)
    assert jnp.allclose(init_out["actor"], actor_out, **tol)
    assert jnp.allclose(init_out["critic"], critic_out, **tol)

    print("KERNEL_OK")
</pallas_src>

<mosaic_0001>
module attributes {stable_mosaic.version = 11 : i64} {
  func.func @_joint_kernel(%arg0: memref<8x32xf32, #tpu.memory_space<vmem>>, %arg1: memref<8x128xf32, #tpu.memory_space<vmem>>, %arg2: memref<32x128xbf16, #tpu.memory_space<vmem>>, %arg3: memref<1x128xf32, #tpu.memory_space<vmem>>, %arg4: memref<128x256xbf16, #tpu.memory_space<vmem>>, %arg5: memref<1x256xf32, #tpu.memory_space<vmem>>, %arg6: memref<8x256xf32, #tpu.memory_space<vmem>>) attributes {dimension_semantics = [], scalar_prefetch = 0 : i64, scratch_operands = 0 : i64, tpu.core_type = #tpu.core_type<tc>} {
    %c0 = arith.constant 0 : index
    %c0_0 = arith.constant 0 : index
    %0 = vector.load %arg0[%c0, %c0_0] : memref<8x32xf32, #tpu.memory_space<vmem>>, vector<8x32xf32>
    %1 = arith.truncf %0 : vector<8x32xf32> to vector<8x32xbf16>
    %c0_1 = arith.constant 0 : index
    %c0_2 = arith.constant 0 : index
    %2 = vector.load %arg2[%c0_1, %c0_2] : memref<32x128xbf16, #tpu.memory_space<vmem>>, vector<32x128xbf16>
    %cst = arith.constant dense<0.000000e+00> : vector<8x128xf32>
    %3 = tpu.matmul %1, %2, %cst {dimension_numbers = #tpu.dot_dimension_numbers<[1], [0], [0], [1], [0, 0, 1, 1], [], []>} : vector<8x32xbf16>, vector<32x128xbf16>, vector<8x128xf32> -> vector<8x128xf32>
    %c0_3 = arith.constant 0 : index
    %c0_4 = arith.constant 0 : index
    %4 = vector.load %arg3[%c0_3, %c0_4] : memref<1x128xf32, #tpu.memory_space<vmem>>, vector<1x128xf32>
    %5 = vector.broadcast %4 : vector<1x128xf32> to vector<8x128xf32>
    %6 = arith.addf %3, %5 : vector<8x128xf32>
    %cst_5 = arith.constant 0.000000e+00 : f32
    %7 = vector.broadcast %cst_5 : f32 to vector<8x128xf32>
    %8 = arith.maximumf %6, %7 : vector<8x128xf32>
    %c0_6 = arith.constant 0 : index
    %c0_7 = arith.constant 0 : index
    %9 = vector.load %arg1[%c0_6, %c0_7] : memref<8x128xf32, #tpu.memory_space<vmem>>, vector<8x128xf32>
    %10 = arith.addf %8, %9 : vector<8x128xf32>
    %11 = arith.truncf %10 : vector<8x128xf32> to vector<8x128xbf16>
    %c0_8 = arith.constant 0 : index
    %c0_9 = arith.constant 0 : index
    %12 = vector.load %arg4[%c0_8, %c0_9] : memref<128x256xbf16, #tpu.memory_space<vmem>>, vector<128x256xbf16>
    %cst_10 = arith.constant dense<0.000000e+00> : vector<8x256xf32>
    %13 = tpu.matmul %11, %12, %cst_10 {dimension_numbers = #tpu.dot_dimension_numbers<[1], [0], [0], [1], [0, 0, 1, 1], [], []>} : vector<8x128xbf16>, vector<128x256xbf16>, vector<8x256xf32> -> vector<8x256xf32>
    %c0_11 = arith.constant 0 : index
    %c0_12 = arith.constant 0 : index
    %14 = vector.load %arg5[%c0_11, %c0_12] : memref<1x256xf32, #tpu.memory_space<vmem>>, vector<1x256xf32>
    %15 = vector.broadcast %14 : vector<1x256xf32> to vector<8x256xf32>
    %16 = arith.addf %13, %15 : vector<8x256xf32>
    %17 = tpu.iota {dimensions = array<i32: 1>} : vector<8x256xi32>
    %c128_i32 = arith.constant 128 : i32
    %18 = vector.broadcast %c128_i32 : i32 to vector<8x256xi32>
    %19 = arith.cmpi slt, %17, %18 : vector<8x256xi32>
    %20 = math.tanh %16 : vector<8x256xf32>
    %21 = arith.select %19, %20, %16 : vector<8x256xi1>, vector<8x256xf32>
    %c0_13 = arith.constant 0 : index
    %c0_14 = arith.constant 0 : index
    %22 = vector.load %arg6[%c0_13, %c0_14] : memref<8x256xf32, #tpu.memory_space<vmem>>, vector<8x256xf32>
    tpu.vector_store %arg6[%c0_13, %c0_14], %21 {strides = array<i32>} : memref<8x256xf32, #tpu.memory_space<vmem>>, vector<8x256xf32>,
    return
  }
}

</mosaic_0001>

<bundles_post_ra>
// kernel: _joint_apply.1
= control target key start
LH: loop header
LB: loop body
LE: loop exit
PB: predicated region body
PF: predicated region fallthrough
CT: control target
= control target key end

     0   :  { %11 = vsyncpa [#allocation3], 0  ;;  %s363_s21 = smov [#allocation2]   ;;  %s431_s0 = inlined_call_operand.vmem [shape: f32[8,32], index: 0, kind: input, shape index: {}]   ;;  %s432_s1 = inlined_call_operand.vmem [shape: f32[8,128], index: 1, kind: input, shape index: {}]   ;;  %s433_s2 = inlined_call_operand.vmem [shape: bf16[32,128], index: 2, kind: input, shape index: {}]   ;;  %s434_s3 = inlined_call_operand.vmem [shape: f32[1,128], index: 3, kind: input, shape index: {}]   ;;  %s435_s4 = inlined_call_operand.hbm [shape: bf16[128,256], index: 4, kind: input, shape index: {}]   ;;  %s436_s5 = inlined_call_operand.vmem [shape: f32[1,256], index: 5, kind: input, shape index: {}]   ;;  %s437_s6 = inlined_call_operand.vmem [shape: f32[8,256], index: 6, kind: output, shape index: {}]  }
   0x1   :  { %s25_s22 = sshll.u32 %s363_s21, 4  ;;  %s26_s22 = int_to_ptr.vmem [resolvable:$true] %s25_s22 }
   0x2   :  { %s349_s23 = scalar_lea.vmem %s26_s22, 2048  ;;  %p354_p1 = scmp.lt.s32.totalorder %s26_s22, %s26_s22 }
   0x3   :  { %p350_p0 = scmp.ne.s32.totalorder %s26_s22, %s349_s23  ;;  %p355_p2 = scmp.lt.s32.totalorder %s349_s23, %s349_s23 }
   0x5   :  { %p356_p3 = por %p355_p2, %p354_p1 }
   0x7   :  { %p357_p4 = pnand %p356_p3, %p350_p0 }
   0x9   :  { %360 = shalt.err (!%p357_p4)
}
   0xa   :  { %s364_s24 = smov 128   ;;  %s365_s25 = smov 8  }
   0xb   :  { %31 = dma.hbm_to_vmem [thread:$0]  %s435_s4, 2048, %s26_s22, [#allocation3], %s364_s24, %s364_s24, %s365_s25  }
   0xc   :  { %361 = dma.done.wait [#allocation3], 2048  }
   0xd   :  { %362 = vsyncadd [#allocation3], 4294965248  ;;  %v366_v0 = vmov 0.0   ;;  %vm367_vm0 = vmmov 0   ;;  %v313_v1 = vld [vmem:[%s433_s2 + $0x8] sm:$0xff]   ;;  %v314_v2 = vld [vmem:[%s433_s2] sm:$0xff]   ;;  %v129_v32 = vlaneseq }
   0xe   :  { %299 = vmatprep.subr.bf16.mxu0 %v366_v0  ;;  %303 = vmatprep.mubr.msk.bf16.mxu0 %vm367_vm0, %v366_v0  ;;  %v38_v3 = vld [vmem:[%s431_s0] sm:$0xff]  ;;  %v315_v4 = vld [vmem:[#allocation2 + $0x74] ss:$8 sps:$4 sm:$0xff]   ;;  %v317_v5 = vld [vmem:[#allocation2 + $0x70] ss:$8 sps:$4 sm:$0xff]   ;;  %vm63_vm1 = vcmask 261120  }
   0xf   :  { %300 = vmatpush3.bf16.msra.mxu0 %v313_v1  ;;  %v318_v6 = vld [vmem:[#allocation2 + $0x64] ss:$8 sps:$4 sm:$0xff]   ;;  %v39_v7 = vpack.c.bf16 %v38_v3, %v38_v3  ;;  %219 = vmatprep.subr.bf16.mxu1 %v315_v4  ;;  %v320_v8 = vld [vmem:[#allocation2 + $0x60] ss:$8 sps:$4 sm:$0xff]   ;;  %v321_v9 = vld [vmem:[#allocation2 + $0x54] ss:$8 sps:$4 sm:$0xff]  }
  0x10   :  { %301 = vmatprep.subr.bf16.mxu0 %v366_v0  ;;  %220 = vmatpush1.bf16.msra.mxu1 %v317_v5  ;;  %v323_v10 = vld [vmem:[#allocation2 + $0x50] ss:$8 sps:$4 sm:$0xff]   ;;  %v324_v11 = vld [vmem:[#allocation2 + $0x44] ss:$8 sps:$4 sm:$0xff]   ;;  %v326_v12 = vld [vmem:[#allocation2 + $0x40] ss:$8 sps:$4 sm:$0xff]  }
  0x11   :  { %221 = vmatprep.subr.bf16.mxu1 %v318_v6  ;;  %v327_v13 = vld [vmem:[#allocation2 + $0x34] ss:$8 sps:$4 sm:$0xff]   ;;  %v329_v14 = vld [vmem:[#allocation2 + $0x30] ss:$8 sps:$4 sm:$0xff]   ;;  %v330_v15 = vld [vmem:[#allocation2 + $0x24] ss:$8 sps:$4 sm:$0xff]  }
  0x12   :  { %v332_v16 = vld [vmem:[#allocation2 + $0x20] ss:$8 sps:$4 sm:$0xff]   ;;  %v333_v17 = vld [vmem:[#allocation2 + $0x14] ss:$8 sps:$4 sm:$0xff]   ;;  %v335_v18 = vld [vmem:[#allocation2 + $0x10] ss:$8 sps:$4 sm:$0xff]  }
  0x13   :  { %302 = vmatpush3.bf16.msra.mxu0 %v314_v2  ;;  %v336_v19 = vld [vmem:[#allocation2 + $0x4] ss:$8 sps:$4 sm:$0xff]   ;;  %v338_v20 = vld [vmem:[#allocation2] ss:$8 sps:$4 sm:$0xff]   ;;  %v368_v21 = vmov 0   ;;  %v130_v33 = vshrl.u32 %v129_v32, 7 }
  0x14   :  { %222 = vmatpush1.bf16.msra.mxu1 %v320_v8  ;;  %251 = vmatprep.mubr.bf16.mxu1 %v368_v21  ;;  %v276_v22 = vld [vmem:[%s434_s3] ss:$0 sm:$0xff] }
  0x15   :  { %223 = vmatprep.subr.bf16.mxu1 %v321_v9  ;;  %v108_v25 = vld [vmem:[%s432_s1] sm:$0xff]  ;;  %v131_v34 = vsub.s32 0, %v130_v33  ;;  %v135_v36 = vsub.s32 1, %v130_v33 }
  0x16   :  { %304 = vmatmul.mubr.msk.bf16.vlgmr.msra.gmra.mxu0 %vm63_vm1, %v39_v7  ;;  %v127_v35 = vld [vmem:[%s436_s5] sm:$0x3] }
  0x17   :  { %v132_v37 = vrot.slane %v127_v35, %v131_v34  ;;  %v136_v38 = vrot.slane %v127_v35, %v135_v36 }
  0x18   :  { %224 = vmatpush1.bf16.msra.mxu1 %v323_v10 }
  0x19   :  { %225 = vmatprep.subr.bf16.mxu1 %v324_v11 }
  0x1c   :  { %226 = vmatpush1.bf16.msra.mxu1 %v326_v12 }
  0x1d   :  { %227 = vmatprep.subr.bf16.mxu1 %v327_v13 }
  0x20   :  { %228 = vmatpush1.bf16.msra.mxu1 %v329_v14 }
  0x21   :  { %229 = vmatprep.subr.bf16.mxu1 %v330_v15 }
  0x24   :  { %230 = vmatpush1.bf16.msra.mxu1 %v332_v16 }
  0x25   :  { %231 = vmatprep.subr.bf16.mxu1 %v333_v17 }
  0x28   :  { %232 = vmatpush1.bf16.msra.mxu1 %v335_v18 }
  0x29   :  { %233 = vmatprep.subr.bf16.mxu1 %v336_v19 }
  0x2c   :  { %234 = vmatpush1.bf16.msra.mxu1 %v338_v20 }
  0xd6   :  { %v101_v23 = vpop.f32.mrf.mxu0 }
  0xd7   :  { %v102_v24 = vadd.f32 %v276_v22, %v101_v23 }
  0xd8   :  { %v305_v26 = vpop.f32.mrf.mxu0 }
  0xd9   :  { %v107_v27 = vmax.f32 %v102_v24, 0.0 }
  0xda   :  { %v104_v28 = vpop.f32.mrf.mxu0 }
  0xdb   :  { %v109_v29 = vadd.f32 %v108_v25, %v107_v27 }
  0xdc   :  { %v306_v30 = vpop.f32.mrf.mxu0 }
  0xdd   :  { %v110_v31 = vpack.c.bf16 %v109_v29, %v109_v29 }
  0xdf   :  { %252 = vmatmul.mubr.bf16.vlgmr.msra.gmra.mxu1 %v110_v31 }
 0x19f   :  { %v253_v39 = vpop.f32.mrf.mxu1 }
 0x1a0   :  { %v254_v40 = vadd.f32 %v253_v39, %v132_v37 }
 0x1a1   :  { %v255_v41 = vpop.f32.mrf.mxu1 }
 0x1a2   :  { %339 = vtanh.f32 %v254_v40  ;;  %v256_v42 = vadd.f32 %v255_v41, %v136_v38 }
 0x1a3   :  { %v257_v43 = vpop.f32.mrf.mxu1 }
 0x1a4   :  { %270 = vst [vmem:[%s437_s6 + $0x8] sm:$0xff] %v256_v42 }
 0x1a5   :  { %v258_v44 = vpop.f32.mrf.mxu1 }
 0x1af   :  { %v340_v45 = vpop.eup %339 }
 0x1b0   :  { %269 = vst [vmem:[%s437_s6] sm:$0xff] %v340_v45 }
 0x1b1   :  { %275 = vsyncpa [#allocation3], 1 }

</bundles_post_ra>
